<compile_context>
chip_gen: v7x
topology: tpu7x:2x2x1
jax: 0.10.0
libtpu: 0.0.40
codegen_flags: <defaults>
</compile_context>

<pallas_src>
import functools

import jax
import jax.numpy as jnp
from jax import lax
from jax.experimental import pallas as pl
from jax.experimental.pallas import tpu as pltpu

_VMEM_LIMIT = 32 * 1024 * 1024   # safe on v5e / v6e / v7x
_TILE_BYTES = 2 * 1024 * 1024    # ~2 MiB per (TM, d) tile -> >=85% of roofline


def _round_up(x, m):
    return ((x + m - 1) // m) * m


def _choose_tile(n_tokens, d, itemsize):
    """Token-tile rows: VMEM-budget driven, multiple of 8, grid kept >= 2."""
    tm = max(8, (_TILE_BYTES // (d * itemsize)) // 8 * 8)
    tm = min(tm, _round_up(n_tokens, 8))          # never exceed (rounded) array
    if n_tokens > 8:
        # Keep at least two grid steps so v7x can split the "parallel" token
        # axis across its two TensorCores (harmless on v5e/v6e).
        tm = min(tm, max(8, _round_up((n_tokens + 1) // 2, 8)))
        if tm >= n_tokens:
            tm = max(8, (n_tokens - 1) // 8 * 8)
    return tm


# ----------------------------- LayerNormalization ----------------------------

def _layernorm_kernel(x_ref, w_ref, b_ref, o_ref, *, eps, d_model):
    x = x_ref[...].astype(jnp.float32)                         # (TM, D)
    s1 = jnp.sum(x, axis=-1, keepdims=True)
    s2 = jnp.sum(x * x, axis=-1, keepdims=True)
    mean = s1 * (1.0 / d_model)
    # torch.std default: unbiased (Bessel-corrected) estimator; eps added to std.
    var = jnp.maximum(s2 - s1 * mean, 0.0) * (1.0 / (d_model - 1))
    inv = 1.0 / (jnp.sqrt(var) + eps)                           # (TM, 1) only
    y = (x - mean) * inv * w_ref[...] + b_ref[...]
    o_ref[...] = y.astype(o_ref.dtype)


def layer_norm(x_flat, weight, bias, *, eps, out_dtype=None):
    n, d = x_flat.shape
    out_dtype = x_flat.dtype if out_dtype is None else jnp.dtype(out_dtype)
    tm = _choose_tile(n, d, x_flat.dtype.itemsize)
    w2 = weight.reshape(1, d).astype(jnp.float32)
    b2 = bias.reshape(1, d).astype(jnp.float32)

    cost = pl.CostEstimate(
        flops=8 * n * d,
        transcendentals=n,
        bytes_accessed=n * d * (x_flat.dtype.itemsize + out_dtype.itemsize) + 2 * d * 4,
    )
    return pl.pallas_call(
        functools.partial(_layernorm_kernel, eps=float(eps), d_model=d),
        out_shape=jax.ShapeDtypeStruct((n, d), out_dtype),
        grid_spec=pltpu.PrefetchScalarGridSpec(
            num_scalar_prefetch=0,
            grid=(pl.cdiv(n, tm),),                 # ragged last block is masked
            in_specs=[
                pl.BlockSpec((tm, d), lambda i: (i, 0)),
                pl.BlockSpec((1, d), lambda i: (0, 0)),   # resident across grid
                pl.BlockSpec((1, d), lambda i: (0, 0)),   # resident across grid
            ],
            out_specs=pl.BlockSpec((tm, d), lambda i: (i, 0)),
        ),
        compiler_params=pltpu.CompilerParams(
            dimension_semantics=("parallel",),
            vmem_limit_bytes=_VMEM_LIMIT),
        cost_estimate=cost,
    )(x_flat, w2, b2)


# --------------------------- dropout + residual add ---------------------------

def _hash_u32(x):
    # murmur3-style finalizer: pure 32-bit VPU integer ops (portable; no
    # pltpu.prng_* so the kernel also runs under interpret mode).
    x = x ^ (x >> 16)
    x = x * jnp.uint32(0x7FEB352D)
    x = x ^ (x >> 15)
    x = x * jnp.uint32(0x846CA68B)
    x = x ^ (x >> 16)
    return x


def _residual_dropout_kernel(seed_ref, x_ref, y_ref, o_ref, *,
                             keep_thr, scale, tm, d_model):
    x = x_ref[...]
    y = y_ref[...]
    # Counter-based RNG keyed on (seed, global element index). The same seed
    # reproduces the same mask; callers should vary `seed` per call/layer.
    row0 = (pl.program_id(0) * tm).astype(jnp.uint32)
    row = lax.broadcasted_iota(jnp.uint32, x.shape, 0) + row0
    col = lax.broadcasted_iota(jnp.uint32, x.shape, 1)
    idx = row * jnp.uint32(d_model) + col
    key = seed_ref[0].astype(jnp.uint32) * jnp.uint32(0x9E3779B9)
    bits = _hash_u32(idx ^ key)
    keep = bits >= jnp.uint32(keep_thr)            # integer-domain keep test
    dropped = jnp.where(keep, y * jnp.asarray(scale, y.dtype),
                        jnp.zeros((), y.dtype))
    o_ref[...] = (x + dropped).astype(o_ref.dtype)


def add_dropout_residual(x_flat, y_flat, *, dropout_p, seed):
    n, d = x_flat.shape
    tm = _choose_tile(n, d, x_flat.dtype.itemsize)
    seed_arr = jnp.asarray([seed], dtype=jnp.int32)
    keep_thr = min(int(float(dropout_p) * 4294967296.0), 0xFFFFFFFF)
    scale = 1.0 / (1.0 - float(dropout_p))

    cost = pl.CostEstimate(
        flops=3 * n * d,
        transcendentals=0,
        bytes_accessed=3 * n * d * x_flat.dtype.itemsize,
    )
    return pl.pallas_call(
        functools.partial(_residual_dropout_kernel, keep_thr=keep_thr,
                          scale=scale, tm=tm, d_model=d),
        out_shape=jax.ShapeDtypeStruct((n, d), x_flat.dtype),
        grid_spec=pltpu.PrefetchScalarGridSpec(
            num_scalar_prefetch=1,
            grid=(pl.cdiv(n, tm),),
            in_specs=[
                pl.BlockSpec((tm, d), lambda i, sd: (i, 0)),
                pl.BlockSpec((tm, d), lambda i, sd: (i, 0)),
            ],
            out_specs=pl.BlockSpec((tm, d), lambda i, sd: (i, 0)),
        ),
        compiler_params=pltpu.CompilerParams(
            dimension_semantics=("parallel",),
            vmem_limit_bytes=_VMEM_LIMIT),
        cost_estimate=cost,
    )(seed_arr, x_flat, y_flat)


# ------------------------------ ResidualConnection ----------------------------

def residual_connection(x, sublayer, weight, bias, *, eps=1e-6,
                        dropout_p=0.0, seed=0, intermediate_dtype=None):
    """x: (B, S, D). Returns x + dropout(sublayer(LayerNorm(x)))."""
    b, s, d = x.shape
    x_flat = x.reshape(b * s, d)
    # intermediate_dtype=jnp.bfloat16 halves the HBM round trip to/from the
    # sublayer and puts its matmuls on the bf16 MXU path (f32 kept in-kernel).
    normed = layer_norm(x_flat, weight, bias, eps=eps,
                        out_dtype=intermediate_dtype)
    # TODO(synk): sublayer is an arbitrary callable; applied in plain JAX here.
    sub_out = sublayer(normed.reshape(b, s, d)).reshape(b * s, d)
    sub_out = sub_out.astype(x_flat.dtype)
    if float(dropout_p) == 0.0:
        # Eval fast path: bare add -- XLA fuses it into the sublayer epilogue.
        out = x_flat + sub_out
    else:
        out = add_dropout_residual(x_flat, sub_out,
                                   dropout_p=dropout_p, seed=seed)
    return out.reshape(b, s, d)


if __name__ == "__main__":
    d_model = 128
    batch, seq = 2, 8
    eps = 1e-6

    key = jax.random.PRNGKey(0)
    kx, kw = jax.random.split(key)
    x = jax.random.normal(kx, (batch, seq, d_model), dtype=jnp.float32)
    w_sub = jax.random.normal(kw, (d_model, d_model), dtype=jnp.float32) * 0.02

    # LayerNorm parameters (PyTorch init: weight=1, bias=0).
    gamma = jnp.ones((d_model,), jnp.float32)
    beta = jnp.zeros((d_model,), jnp.float32)

    # Example sublayer: a simple linear projection (plain JAX callable).
    sublayer = lambda t: jnp.einsum("bsd,de->bse", t, w_sub)

    # --- deterministic path (dropout p = 0, i.e. eval mode) -------------------
    out = residual_connection(x, sublayer, gamma, beta, eps=eps,
                              dropout_p=0.0, seed=0)
    out = jax.block_until_ready(out)

    # Pure-JAX reference mirroring the PyTorch module.
    def ref_layernorm(t):
        mean = jnp.mean(t, axis=-1, keepdims=True)
        std = jnp.std(t, axis=-1, keepdims=True, ddof=1)  # torch.std (unbiased)
        return gamma * (t - mean) / (std + eps) + beta

    sub_ref = sublayer(ref_layernorm(x))
    ref = x + sub_ref
    assert out.shape == (batch, seq, d_model)
    assert jnp.allclose(out, ref, atol=1e-5, rtol=1e-5)

    # --- stochastic path (dropout p = 0.5, training mode) ---------------------
    p = 0.5
    out_drop = residual_connection(x, sublayer, gamma, beta, eps=eps,
                                   dropout_p=p, seed=1234)
    out_drop = jax.block_until_ready(out_drop)
    kept = x + sub_ref * (1.0 / (1.0 - p))
    ok = jnp.isclose(out_drop, x, atol=1e-4) | jnp.isclose(out_drop, kept, atol=1e-4)
    assert bool(jnp.all(ok))

    print("KERNEL_OK")
</pallas_src>

<mosaic_0001>
module attributes {stable_mosaic.version = 11 : i64} {
  func.func @_layernorm_kernel(%arg0: i32, %arg1: memref<8x128xf32, #tpu.memory_space<vmem>>, %arg2: memref<1x128xf32, #tpu.memory_space<vmem>>, %arg3: memref<1x128xf32, #tpu.memory_space<vmem>>, %arg4: memref<8x128xf32, #tpu.memory_space<vmem>>) attributes {dimension_semantics = [#tpu.dimension_semantics<parallel>], iteration_bounds = array<i64: 2>, scalar_prefetch = 0 : i64, scratch_operands = 0 : i64, tpu.core_type = #tpu.core_type<tc>, window_params = [{transform_indices = @transform_0, window_bounds = array<i64: 8, 128>}, {pipeline_mode = #tpu.pipeline_mode<synchronous>, transform_indices = @transform_1, window_bounds = array<i64: 1, 128>}, {pipeline_mode = #tpu.pipeline_mode<synchronous>, transform_indices = @transform_2, window_bounds = array<i64: 1, 128>}, {transform_indices = @transform_3, window_bounds = array<i64: 8, 128>}]} {
    %c0 = arith.constant 0 : index
    %c0_0 = arith.constant 0 : index
    %0 = vector.load %arg1[%c0, %c0_0] : memref<8x128xf32, #tpu.memory_space<vmem>>, vector<8x128xf32>
    %cst = arith.constant dense<0.000000e+00> : vector<8xf32>
    %1 = vector.multi_reduction <add>, %0, %cst [1] : vector<8x128xf32> to vector<8xf32>
    %2 = vector.shape_cast %1 : vector<8xf32> to vector<8x1xf32>
    %3 = arith.mulf %0, %0 : vector<8x128xf32>
    %cst_1 = arith.constant dense<0.000000e+00> : vector<8xf32>
    %4 = vector.multi_reduction <add>, %3, %cst_1 [1] : vector<8x128xf32> to vector<8xf32>
    %5 = vector.shape_cast %4 : vector<8xf32> to vector<8x1xf32>
    %cst_2 = arith.constant 7.812500e-03 : f32
    %6 = vector.broadcast %cst_2 : f32 to vector<8x1xf32>
    %7 = arith.mulf %2, %6 : vector<8x1xf32>
    %8 = arith.mulf %2, %7 : vector<8x1xf32>
    %9 = arith.subf %5, %8 : vector<8x1xf32>
    %cst_3 = arith.constant 0.000000e+00 : f32
    %10 = vector.broadcast %cst_3 : f32 to vector<8x1xf32>
    %11 = arith.maximumf %9, %10 : vector<8x1xf32>
    %cst_4 = arith.constant 0.00787401571 : f32
    %12 = vector.broadcast %cst_4 : f32 to vector<8x1xf32>
    %13 = arith.mulf %11, %12 : vector<8x1xf32>
    %14 = math.sqrt %13 : vector<8x1xf32>
    %cst_5 = arith.constant 9.99999997E-7 : f32
    %15 = vector.broadcast %cst_5 : f32 to vector<8x1xf32>
    %16 = arith.addf %14, %15 : vector<8x1xf32>
    %cst_6 = arith.constant 1.000000e+00 : f32
    %17 = vector.broadcast %cst_6 : f32 to vector<8x1xf32>
    %18 = arith.divf %17, %16 : vector<8x1xf32>
    %19 = vector.broadcast %7 : vector<8x1xf32> to vector<8x128xf32>
    %20 = arith.subf %0, %19 : vector<8x128xf32>
    %21 = vector.broadcast %18 : vector<8x1xf32> to vector<8x128xf32>
    %22 = arith.mulf %20, %21 : vector<8x128xf32>
    %c0_7 = arith.constant 0 : index
    %c0_8 = arith.constant 0 : index
    %23 = vector.load %arg2[%c0_7, %c0_8] : memref<1x128xf32, #tpu.memory_space<vmem>>, vector<1x128xf32>
    %24 = vector.broadcast %23 : vector<1x128xf32> to vector<8x128xf32>
    %25 = arith.mulf %22, %24 : vector<8x128xf32>
    %c0_9 = arith.constant 0 : index
    %c0_10 = arith.constant 0 : index
    %26 = vector.load %arg3[%c0_9, %c0_10] : memref<1x128xf32, #tpu.memory_space<vmem>>, vector<1x128xf32>
    %27 = vector.broadcast %26 : vector<1x128xf32> to vector<8x128xf32>
    %28 = arith.addf %25, %27 : vector<8x128xf32>
    %c0_11 = arith.constant 0 : index
    %c0_12 = arith.constant 0 : index
    %29 = vector.load %arg4[%c0_11, %c0_12] : memref<8x128xf32, #tpu.memory_space<vmem>>, vector<8x128xf32>
    tpu.vector_store %arg4[%c0_11, %c0_12], %28 {strides = array<i32>} : memref<8x128xf32, #tpu.memory_space<vmem>>, vector<8x128xf32>,
    return
  }
  func.func @transform_0(%arg0: i32) -> (i32, i32) {
    %c0_i32 = arith.constant 0 : i32
    %c0_i32_0 = arith.constant 0 : i32
    return %arg0, %c0_i32 : i32, i32
  }
  func.func @transform_1(%arg0: i32) -> (i32, i32) {
    %c0_i32 = arith.constant 0 : i32
    %c0_i32_0 = arith.constant 0 : i32
    %c0_i32_1 = arith.constant 0 : i32
    return %c0_i32, %c0_i32_0 : i32, i32
  }
  func.func @transform_2(%arg0: i32) -> (i32, i32) {
    %c0_i32 = arith.constant 0 : i32
    %c0_i32_0 = arith.constant 0 : i32
    %c0_i32_1 = arith.constant 0 : i32
    return %c0_i32, %c0_i32_0 : i32, i32
  }
  func.func @transform_3(%arg0: i32) -> (i32, i32) {
    %c0_i32 = arith.constant 0 : i32
    %c0_i32_0 = arith.constant 0 : i32
    return %arg0, %c0_i32 : i32, i32
  }
}

</mosaic_0001>

<bundles_post_ra>
// kernel: tpu_custom_call.1
= control target key start
LH: loop header
LB: loop body
LE: loop exit
PB: predicated region body
PF: predicated region fallthrough
CT: control target
= control target key end

     0   :  { %8 = vsyncpa [#allocation3], 0  ;;  %s665_s0 = inlined_call_operand.hbm [shape: f32[16,128], index: 0, kind: input, shape index: {}]   ;;  %s666_s1 = inlined_call_operand.vmem [shape: f32[1,128], index: 1, kind: input, shape index: {}]   ;;  %s667_s2 = inlined_call_operand.vmem [shape: f32[1,128], index: 2, kind: input, shape index: {}]   ;;  %s668_s3 = inlined_call_operand.hbm [shape: f32[16,128], index: 3, kind: output, shape index: {}]  }
   0x1   :  { %10 = vsyncpa [#allocation3 + $0x1], 0 }
   0x2   :  { %11 = vsyncpa [#allocation4], 0 }
   0x3   :  { %13 = vsyncpa [#allocation4 + $0x1], 0  ;;  %s494_s12 = smov 0   ;;  %s496_s13 = smov 0  }
   0x4   :  { %s498_s14 = smov 0   ;;  %s500_s15 = smov 0  }
   0x5 LB: > { %s515_s16 = sadd.s32 4294967295, %s470_s15   ;;  %s310_s17 = sadd.s32 4294967294, %s470_s15   ;;  %s470_s15 = sphi %s500_s15, %s683_s15   ;;  %s466_s14 = sphi %s498_s14, %s682_s14   ;;  %s462_s13 = sphi %s496_s13, %s681_s13   ;;  %s458_s12 = sphi %s494_s12, %s680_s12  }
   0x6   : > { %s519_s18 = sadd.s32 1, %s470_s15   ;;  %s26_s19 = sadd.s32 1, %s466_s14 }
   0x7   : > { %s23_s20 = ssub.s32 %s470_s15, %s519_s18  ;;  %p33_p0 = scmp.ne.s32.totalorder %s466_s14, %s462_s13 }
   0x8   : > { %p24_p1 = scmp.eq.s32.totalorder %s23_s20, 0  ;;  %p34_p2 = scmp.eq.s32.totalorder %s470_s15, 0 }
   0x9   : > { %p39_p3 = scmp.ne.s32.totalorder %s462_s13, %s458_s12  ;;  %p40_p4 = scmp.eq.s32.totalorder %s515_s16, 0 }
   0xa   : > { %s531_s21 = scalar_select %p24_p1, %s466_s14, %s26_s19  }
   0xb   : > { %p533_p5 = por %p34_p2, %p33_p0  ;;  %p537_p6 = por %p40_p4, %p39_p3 }
   0xc   : > { %p105_p7 = scmp.eq.s32.totalorder %s515_s16, 1  ;;  %p111_p8 = scmp.eq.s32.totalorder %s310_s17, 1 }
   0xd   : > { %p336_p10 = scmp.lt.s32.totalorder %s470_s15, 2  ;;  %s137_s26 = sand.u32 1, %s466_s14  }
   0xe   : > { %p544_p11 = por %p105_p7, %p33_p0  ;;  %p548_p12 = por %p111_p8, %p39_p3 }
   0xf   : > { %s314_s27 = sshll.u32 %s470_s15, 7  ;;  %s313_s28 = sshll.u32 %s137_s26, 3 }
  0x10   : > { %s672_s24 = scalar_select %p544_p11, 1, 0 }
  0x11   : > { %s673_s25 = scalar_select %p548_p12, 1, 0 }
  0x12   : > { %s557_s4 = scalar_lea.hbm %s665_s0, %s314_s27  ;;  %s141_s5 = scalar_lea.vmem [#allocation2], %s313_s28 }
  0x13   : > { %s148_s6 = sshll.u32 %s141_s5, 4  ;;  %p561_p13 = pnand %p336_p10, %p533_p5  ;;  %s565_s6 = int_to_ptr.vmem [resolvable:$true] %s148_s6 }
  0x14   : > { %s138_s8 = scalar_lea.sflag [#allocation3], %s137_s26  ;;  %s374_s9 = scalar_lea.hbm %s557_s4, 128 }
  0x15   : > { %p375_p2 = scmp.ne.s32.totalorder %s557_s4, %s374_s9  ;;  %p376_p3 = pneg %p561_p13 }
  0x16   : > { %s379_s17 = scalar_lea.hbm %s665_s0, 256  ;;  %p380_p5 = scmp.lt.u32.totalorder %s557_s4, %s665_s0 }
  0x17   : > { %p377_p4 = pnand %p376_p3, %p375_p2  ;;  %p381_p8 = scmp.lt.u32.totalorder %s379_s17, %s374_s9 }
  0x18   : > { %p383_p9 = scmp.lt.u32.totalorder %s374_s9, %s557_s4 }
  0x19   : > { %p378_p7 = pneg %p377_p4  ;;  %p382_p10 = por %p381_p8, %p380_p5 }
  0x1b   : > { %p384_p0 = por %p383_p9, %p382_p10 }
  0x1d   : > { %p385_p1 = pnand %p384_p0, %p378_p7 }
  0x1f   : > { %388 = shalt.err (!%p385_p1)
}
  0x20   : > { %s389_s22 = scalar_lea.vmem %s565_s6, 128  ;;  %s472_s26 = smov [#allocation2]  }
  0x21   : > { %p390_p2 = scmp.ne.s32.totalorder %s565_s6, %s389_s22  ;;  %s394_s27 = sshll.u32 %s472_s26, 4  ;;  %s395_s27 = int_to_ptr.vmem [resolvable:$false] %s394_s27 }
  0x22   : > { %s396_s28 = scalar_lea.vmem %s395_s27, 256  ;;  %p397_p11 = scmp.lt.s32.totalorder %s565_s6, %s395_s27 }
  0x23   : > { %p392_p4 = pnand %p390_p2, %p376_p3  ;;  %p398_p5 = scmp.lt.s32.totalorder %s396_s28, %s389_s22 }
  0x25   : > { %p393_p12 = pneg %p392_p4  ;;  %p399_p8 = por %p398_p5, %p397_p11 }
  0x27   : > { %p400_p9 = pnand %p399_p8, %p393_p12 }
  0x29   : > { %403 = shalt.err (!%p400_p9)
}
  0x2a   : > { %331 = dma.hbm_to_vmem [thread:$0]  (!%p561_p13), %s557_s4, 128, %s565_s6, %s138_s8  }
  0x2b   : > { %p675_p0 = scmp.lt.s32.totalorder %s470_s15, 3  ;;  %p676_p1 = scmp.ge.s32.totalorder %s470_s15, 1 }
  0x2d   : > { %p154_p3 = pnand %p676_p1, %p675_p0 }
  0x2e   : > { %s599_s29 = sand.u32 (!%p154_p3), 1, %s462_s13  }
  0x2f   : > { %157 = sbr.rel (%p154_p3) target bundleno = 256 (0x100), region = 32  ;;  %s316_s30 = sshll.u32 (!%p154_p3), %s599_s29, 3 }
  0x30   : > { %s160_s5 = scalar_lea.sflag (!%p154_p3), [#allocation3], %s599_s29  ;;  %s163_s7 = scalar_lea.vmem (!%p154_p3), [#allocation2], %s316_s30 }
  0x36   : > { %449 = dma.done.wait (%p537_p6), %s160_s5, 128  }
  0x37   : > { %451 = vsyncadd (%p537_p6), %s160_s5, 4294967168  ;;  %v186_v0 = vld [vmem:[%s163_s7] sm:$0xff]  ;;  %s321_s9 = sshll.u32 %s515_s16, 7  ;;  %s185_s10 = scalar_lea.vmem [#allocation5], %s316_s30 }
  0x38   : > { %187 = vadd.xlane.f32.xlu0 %v186_v0  ;;  %v189_v1 = vmul.f32 %v186_v0, %v186_v0  ;;  %v318_v17 = vld [vmem:[%s666_s1] ss:$0 sm:$0xff]  ;;  %s240_s11 = sshll.u32 %s185_s10, 4  ;;  %s621_s20 = scalar_lea.hbm %s668_s3, %s321_s9  ;;  %s623_s11 = int_to_ptr.vmem [resolvable:$true] %s240_s11 }
  0x39   : > { %v319_v19 = vld [vmem:[%s667_s2] ss:$0 sm:$0xff]  ;;  %s227_s22 = scalar_lea.sflag [#allocation4], %s599_s29  ;;  %s404_s26 = scalar_lea.vmem %s623_s11, 128 }
  0x3a   : > { %p405_p6 = scmp.ne.s32.totalorder %s623_s11, %s404_s26  ;;  %p677_p11 = scmp.ne.s32.totalorder %s672_s24, 0 }
  0x3b   : > { %s473_s16 = smov [#allocation5]  }
  0x3c   : > { %190 = vadd.xlane.f32.xlu0 %v189_v1  ;;  %p406_p12 = pnand %p405_p6, %p677_p11  ;;  %s408_s27 = sshll.u32 %s473_s16, 4  ;;  %s409_s27 = int_to_ptr.vmem [resolvable:$false] %s408_s27 }
  0x3d   : > { %s410_s28 = scalar_lea.vmem %s409_s27, 256  ;;  %p411_p7 = scmp.lt.s32.totalorder %s623_s11, %s409_s27 }
  0x3e   : > { %p407_p13 = pneg %p406_p12  ;;  %p412_p10 = scmp.lt.s32.totalorder %s410_s28, %s404_s26 }
  0x40   : > { %p413_p2 = por %p412_p10, %p411_p7 }
  0x42   : > { %p414_p4 = pnand %p413_p2, %p407_p13 }
  0xc5   : > { %v188_v2 = vpop.xlane.xlu0 %187 }
  0xc6   : > { %v192_v3 = vmul.f32 0.0078125, %v188_v2 }
  0xc8   : > { %v193_v4 = vmul.f32 %v192_v3, %v188_v2  ;;  %v207_v15 = vsub.f32 %v186_v0, %v192_v3 }
  0xc9   : > { %v191_v5 = vpop.xlane.xlu0 %190 }
  0xca   : > { %v194_v6 = vsub.f32 %v191_v5, %v193_v4 }
  0xcc   : > { %v195_v7 = vmax.f32 %v194_v6, 0.0 }
  0xce   : > { %v196_v8 = vmul.f32 0.007874016, %v195_v7 }
  0xd0   : > { %370 = vrsqrt.f32 %v196_v8  ;;  %vm199_vm0 = vcmp.eq.f32.partialorder %v196_v8, inf  ;;  %v202_v11 = vand.u32 2147483648, %v196_v8  ;;  %vm201_vm1 = vcmp.eq.f32.partialorder %v196_v8, 0.0 }
  0xda   : > { %v371_v9 = vpop.eup %370 }
  0xdb   : > { %v198_v10 = vmul.f32 %v371_v9, %v196_v8 }
  0xdd   : > { %v200_v12 = vsel %vm199_vm0, %v196_v8, %v198_v10 }
  0xde   : > { %v203_v13 = vsel %vm201_vm1, %v202_v11, %v200_v12 }
  0xdf   : > { %v204_v14 = vadd.f32 1e-06, %v203_v13 }
  0xe1   : > { %372 = vrcp.f32 %v204_v14 }
  0xeb   : > { %v373_v16 = vpop.eup %372 }
  0xec   : > { %v208_v18 = vmul.f32 %v373_v16, %v207_v15 }
  0xee   : > { %v216_v20 = vmul.f32 %v318_v17, %v208_v18 }
  0xf0   : > { %v224_v21 = vadd.f32 %v319_v19, %v216_v20 }
  0xf2   : > { %225 = vst [vmem:[%s185_s10] sm:$0xff] %v224_v21 }
  0xf3   : > { %417 = shalt.err (!%p414_p4)
}
  0xf4   : > { %s418_s29 = scalar_lea.hbm %s621_s20, 128  ;;  %s422_s7 = scalar_lea.hbm %s668_s3, 256 }
  0xf5   : > { %p419_p5 = scmp.ne.s32.totalorder %s621_s20, %s418_s29  ;;  %p423_p0 = scmp.lt.u32.totalorder %s621_s20, %s668_s3 }
  0xf6   : > { %p424_p1 = scmp.lt.u32.totalorder %s422_s7, %s418_s29  ;;  %p426_p6 = scmp.lt.u32.totalorder %s418_s29, %s621_s20 }
  0xf7   : > { %p420_p8 = pnand %p419_p5, %p677_p11 }
  0xf8   : > { %p425_p3 = por %p424_p1, %p423_p0 }
  0xf9   : > { %p421_p9 = pneg %p420_p8 }
  0xfa   : > { %p427_p12 = por %p426_p6, %p425_p3 }
  0xfc   : > { %p428_p13 = pnand %p427_p12, %p421_p9 }
  0xfe   : > { %431 = shalt.err (!%p428_p13)
}
  0xff   : > { %326 = dma.vmem_to_hbm [thread:$0]  (%p677_p11), %s623_s11, 128, %s621_s20, %s227_s22  }
 0x100 PF: > { %s252_s6 = sand.u32 1, %s458_s12   ;;  %p678_p7 = scmp.ne.s32.totalorder %s673_s25, 0 }
 0x101   : > { %p679_p10 = scmp.ge.s32.totalorder %s470_s15, 2  ;;  %s253_s8 = scalar_lea.sflag [#allocation4], %s252_s6 }
 0x103   : > { %p333_p2 = pnand %p679_p10, %p678_p7 }
 0x105   : > { %453 = dma.done.wait (!%p333_p2), %s253_s8, 128  }
 0x106   : > { %455 = vsyncadd (!%p333_p2), %s253_s8, 4294967168  ;;  %p16_p4 = scmp.ge.s32.totalorder %s519_s18, 4   ;;  %s680_s12 = smov %s462_s13 }
 0x107   : > { %s681_s13 = smov %s466_s14  ;;  %s682_s14 = smov %s531_s21 }
 0x108   : > { %s683_s15 = smov %s519_s18  ;;  %18 = sbr.rel (!%p16_p4) target bundleno = 5 (0x5), region = 77 }
 0x10f   :  { %258 = vsyncpa [#allocation3], 1 }
 0x110   :  { %260 = vsyncpa [#allocation3 + $0x1], 1 }
 0x111   :  { %261 = vsyncpa [#allocation4], 1 }
 0x112   :  { %263 = vsyncpa [#allocation4 + $0x1], 1 }

</bundles_post_ra>
